<compile_context>
chip_gen: v5e
topology: v5e:2x2
jax: 0.10.0
libtpu: 0.0.40
codegen_flags: <defaults>
</compile_context>

<pallas_src>
import jax
import jax.numpy as jnp
from jax.experimental import pallas as pl
from jax.experimental.pallas import tpu as pltpu

hidden_size = 64
input_size = 100
index_vector = [0, 1, 2, 3, 5]   # only its length is used by the PyTorch module
output_size = len(index_vector)


def _round_up(x, m):
    return ((x + m - 1) // m) * m


def decoder_kernel(x_ref, w1_ref, b1_ref, w2_ref, b2_ref, o_ref):
    # fc1 + relu  (MXU matmul, f32 accumulate)
    h = jnp.dot(x_ref[...], w1_ref[...], preferred_element_type=jnp.float32)
    h = jnp.maximum(h + b1_ref[...], 0.0)          # (TB, H) + (1, H) broadcast
    # fc2
    y = jnp.dot(h, w2_ref[...], preferred_element_type=jnp.float32)
    o_ref[...] = (y + b2_ref[...]).astype(o_ref.dtype)


def decoder_forward(x, w1, b1, w2, b2, *, block_batch=4096):
    """x: (B, input_size) f32; returns (B, output_size) f32.

    Weights are stored transposed relative to PyTorch, i.e. (in, out);
    biases are (1, out) rows so they broadcast over the batch inside the kernel.
    No activation padding is done in the wrapper: K=100 and the ragged last
    batch block are handled by Mosaic (lane padding in VMEM, masked stores).
    """
    B, K = x.shape
    H = w1.shape[1]
    O = w2.shape[1]

    # Batch tile: always a multiple of 8 (sublane rule), capped at block_batch,
    # no larger than the 8-rounded batch.
    TB = min(block_batch, _round_up(B, 8))
    TB = max(8, (TB // 8) * 8)
    grid = (pl.cdiv(B, TB),)

    cost = pl.CostEstimate(
        flops=2 * B * (K * H + H * O),
        transcendentals=0,
        bytes_accessed=4 * (B * (K + O) + K * H + H + H * O + O),
    )

    return pl.pallas_call(
        decoder_kernel,
        out_shape=jax.ShapeDtypeStruct((B, O), jnp.float32),
        grid=grid,
        in_specs=[
            pl.BlockSpec((TB, K), lambda i: (i, 0)),   # x tile streams (K = full dim)
            pl.BlockSpec((K, H), lambda i: (0, 0)),    # weights resident in VMEM
            pl.BlockSpec((1, H), lambda i: (0, 0)),
            pl.BlockSpec((H, O), lambda i: (0, 0)),
            pl.BlockSpec((1, O), lambda i: (0, 0)),
        ],
        out_specs=pl.BlockSpec((TB, O), lambda i: (i, 0)),
        compiler_params=pltpu.CompilerParams(
            dimension_semantics=("parallel",)          # megacore on v7x
        ),
        cost_estimate=cost,
    )(x, w1, b1, w2, b2)


def init_params(key):
    """Deterministic init mimicking PyTorch nn.Linear default (uniform +-1/sqrt(fan_in)).

    Stored once in kernel-friendly layout — (in, out) weights, (1, out) biases —
    so no per-call transform sits in the hot path.
    """
    k1, k2, k3, k4 = jax.random.split(key, 4)
    bound1 = 1.0 / jnp.sqrt(input_size)
    bound2 = 1.0 / jnp.sqrt(hidden_size)
    w1 = jax.random.uniform(k1, (input_size, hidden_size), jnp.float32, -bound1, bound1)
    b1 = jax.random.uniform(k2, (1, hidden_size), jnp.float32, -bound1, bound1)
    w2 = jax.random.uniform(k3, (hidden_size, output_size), jnp.float32, -bound2, bound2)
    b2 = jax.random.uniform(k4, (1, output_size), jnp.float32, -bound2, bound2)
    return w1, b1, w2, b2


if __name__ == "__main__":
    key = jax.random.PRNGKey(0)
    k_params, k_x1, k_x2 = jax.random.split(key, 3)

    w1, b1, w2, b2 = init_params(k_params)

    # Small batch (single grid step, exact tile).
    batch = 8
    x = jax.random.normal(k_x1, (batch, input_size), jnp.float32)
    y = jax.block_until_ready(decoder_forward(x, w1, b1, w2, b2))
    y_ref = jnp.maximum(x @ w1 + b1, 0.0) @ w2 + b2
    assert y.shape == (batch, output_size)
    assert jnp.allclose(y, y_ref, atol=1e-5, rtol=1e-5)

    # Non-tile-multiple batch to exercise multi-step grid + ragged last block.
    batch2 = 200
    x2 = jax.random.normal(k_x2, (batch2, input_size), jnp.float32)
    y2 = jax.block_until_ready(decoder_forward(x2, w1, b1, w2, b2, block_batch=64))
    y2_ref = jnp.maximum(x2 @ w1 + b1, 0.0) @ w2 + b2
    assert y2.shape == (batch2, output_size)
    assert jnp.allclose(y2, y2_ref, atol=1e-5, rtol=1e-5)

    print("KERNEL_OK")
</pallas_src>

<mosaic_0001>
module attributes {stable_mosaic.version = 11 : i64} {
  func.func @decoder_kernel(%arg0: i32, %arg1: memref<8x100xf32, #tpu.memory_space<vmem>>, %arg2: memref<100x64xf32, #tpu.memory_space<vmem>>, %arg3: memref<1x64xf32, #tpu.memory_space<vmem>>, %arg4: memref<64x5xf32, #tpu.memory_space<vmem>>, %arg5: memref<1x5xf32, #tpu.memory_space<vmem>>, %arg6: memref<8x5xf32, #tpu.memory_space<vmem>>) attributes {dimension_semantics = [#tpu.dimension_semantics<parallel>], iteration_bounds = array<i64: 1>, scalar_prefetch = 0 : i64, scratch_operands = 0 : i64, tpu.core_type = #tpu.core_type<tc>, window_params = [{transform_indices = @transform_0, window_bounds = array<i64: 8, 100>}, {pipeline_mode = #tpu.pipeline_mode<synchronous>, transform_indices = @transform_1, window_bounds = array<i64: 100, 64>}, {pipeline_mode = #tpu.pipeline_mode<synchronous>, transform_indices = @transform_2, window_bounds = array<i64: 1, 64>}, {pipeline_mode = #tpu.pipeline_mode<synchronous>, transform_indices = @transform_3, window_bounds = array<i64: 64, 5>}, {pipeline_mode = #tpu.pipeline_mode<synchronous>, transform_indices = @transform_4, window_bounds = array<i64: 1, 5>}, {transform_indices = @transform_5, window_bounds = array<i64: 8, 5>}]} {
    %c0 = arith.constant 0 : index
    %c0_0 = arith.constant 0 : index
    %0 = vector.load %arg1[%c0, %c0_0] : memref<8x100xf32, #tpu.memory_space<vmem>>, vector<8x100xf32>
    %c0_1 = arith.constant 0 : index
    %c0_2 = arith.constant 0 : index
    %1 = vector.load %arg2[%c0_1, %c0_2] : memref<100x64xf32, #tpu.memory_space<vmem>>, vector<100x64xf32>
    %cst = arith.constant dense<0.000000e+00> : vector<8x64xf32>
    %2 = tpu.matmul %0, %1, %cst {dimension_numbers = #tpu.dot_dimension_numbers<[1], [0], [0], [1], [0, 0, 1, 1], [], []>} : vector<8x100xf32>, vector<100x64xf32>, vector<8x64xf32> -> vector<8x64xf32>
    %c0_3 = arith.constant 0 : index
    %c0_4 = arith.constant 0 : index
    %3 = vector.load %arg3[%c0_3, %c0_4] : memref<1x64xf32, #tpu.memory_space<vmem>>, vector<1x64xf32>
    %4 = vector.broadcast %3 : vector<1x64xf32> to vector<8x64xf32>
    %5 = arith.addf %2, %4 : vector<8x64xf32>
    %cst_5 = arith.constant 0.000000e+00 : f32
    %6 = vector.broadcast %cst_5 : f32 to vector<8x64xf32>
    %7 = arith.maximumf %5, %6 : vector<8x64xf32>
    %c0_6 = arith.constant 0 : index
    %c0_7 = arith.constant 0 : index
    %8 = vector.load %arg4[%c0_6, %c0_7] : memref<64x5xf32, #tpu.memory_space<vmem>>, vector<64x5xf32>
    %cst_8 = arith.constant dense<0.000000e+00> : vector<8x5xf32>
    %9 = tpu.matmul %7, %8, %cst_8 {dimension_numbers = #tpu.dot_dimension_numbers<[1], [0], [0], [1], [0, 0, 1, 1], [], []>} : vector<8x64xf32>, vector<64x5xf32>, vector<8x5xf32> -> vector<8x5xf32>
    %c0_9 = arith.constant 0 : index
    %c0_10 = arith.constant 0 : index
    %10 = vector.load %arg5[%c0_9, %c0_10] : memref<1x5xf32, #tpu.memory_space<vmem>>, vector<1x5xf32>
    %11 = vector.broadcast %10 : vector<1x5xf32> to vector<8x5xf32>
    %12 = arith.addf %9, %11 : vector<8x5xf32>
    %c0_11 = arith.constant 0 : index
    %c0_12 = arith.constant 0 : index
    %13 = vector.load %arg6[%c0_11, %c0_12] : memref<8x5xf32, #tpu.memory_space<vmem>>, vector<8x5xf32>
    tpu.vector_store %arg6[%c0_11, %c0_12], %12 {strides = array<i32>} : memref<8x5xf32, #tpu.memory_space<vmem>>, vector<8x5xf32>,
    return
  }
  func.func @transform_0(%arg0: i32) -> (i32, i32) {
    %c0_i32 = arith.constant 0 : i32
    %c0_i32_0 = arith.constant 0 : i32
    return %arg0, %c0_i32 : i32, i32
  }
  func.func @transform_1(%arg0: i32) -> (i32, i32) {
    %c0_i32 = arith.constant 0 : i32
    %c0_i32_0 = arith.constant 0 : i32
    %c0_i32_1 = arith.constant 0 : i32
    return %c0_i32, %c0_i32_0 : i32, i32
  }
  func.func @transform_2(%arg0: i32) -> (i32, i32) {
    %c0_i32 = arith.constant 0 : i32
    %c0_i32_0 = arith.constant 0 : i32
    %c0_i32_1 = arith.constant 0 : i32
    return %c0_i32, %c0_i32_0 : i32, i32
  }
  func.func @transform_3(%arg0: i32) -> (i32, i32) {
    %c0_i32 = arith.constant 0 : i32
    %c0_i32_0 = arith.constant 0 : i32
    %c0_i32_1 = arith.constant 0 : i32
    return %c0_i32, %c0_i32_0 : i32, i32
  }
  func.func @transform_4(%arg0: i32) -> (i32, i32) {
    %c0_i32 = arith.constant 0 : i32
    %c0_i32_0 = arith.constant 0 : i32
    %c0_i32_1 = arith.constant 0 : i32
    return %c0_i32, %c0_i32_0 : i32, i32
  }
  func.func @transform_5(%arg0: i32) -> (i32, i32) {
    %c0_i32 = arith.constant 0 : i32
    %c0_i32_0 = arith.constant 0 : i32
    return %arg0, %c0_i32 : i32, i32
  }
}

</mosaic_0001>

<bundles_post_ra>
// kernel: tpu_custom_call.1
= control target key start
LH: loop header
LB: loop body
LE: loop exit
PB: predicated region body
PF: predicated region fallthrough
CT: control target
= control target key end

     0   :  { %vm43_vm0 = vcmask 1043456   ;;  %s260_s0 = inlined_call_operand.vmem [shape: f32[8,100], index: 0, kind: input, shape index: {}]   ;;  %s261_s1 = inlined_call_operand.vmem [shape: f32[100,64], index: 1, kind: input, shape index: {}]   ;;  %s262_s2 = inlined_call_operand.vmem [shape: f32[1,64], index: 2, kind: input, shape index: {}]   ;;  %s263_s3 = inlined_call_operand.vmem [shape: f32[64,5], index: 3, kind: input, shape index: {}]   ;;  %s264_s4 = inlined_call_operand.vmem [shape: f32[1,5], index: 4, kind: input, shape index: {}]   ;;  %s265_s5 = inlined_call_operand.hbm [shape: f32[8,5], index: 5, kind: output, shape index: {}]  }
   0x1   :  { %v34_v0 = vld [vmem:[%s261_s1 + $0x60] sm:$0xf]  ;;  %v33_v1 = vld [vmem:[%s261_s1 + $0x58] sm:$0xff]  ;;  %v32_v2 = vld [vmem:[%s261_s1 + $0x50] sm:$0xff] }
   0x2   :  { %122 = vmatpush.msk.msra.mxu0 %vm43_vm0, %v34_v0  ;;  %v31_v3 = vld [vmem:[%s261_s1 + $0x48] sm:$0xff]  ;;  %v75_v4 = vld [vmem:[%s263_s3 + $0x38] sm:$0xff]  ;;  %v74_v5 = vld [vmem:[%s263_s3 + $0x30] sm:$0xff] }
   0x3   :  { %92 = vmatpush.msra.mxu1 %v75_v4  ;;  %v30_v6 = vld [vmem:[%s261_s1 + $0x40] sm:$0xff]  ;;  %v73_v7 = vld [vmem:[%s263_s3 + $0x28] sm:$0xff] }
   0x4   :  { %51 = vmatpush.msra.mxu0 %v33_v1 }
   0x5   :  { %93 = vmatpush.msra.mxu1 %v74_v5 }
   0x6   :  { %52 = vmatpush.msra.mxu0 %v32_v2 }
   0x8   :  { %53 = vmatpush.msra.mxu0 %v31_v3 }
   0x9   :  { %10 = vsyncpa [#allocation3], 0  ;;  %v29_v8 = vld [vmem:[%s261_s1 + $0x38] sm:$0xff]  ;;  %v72_v9 = vld [vmem:[%s263_s3 + $0x20] sm:$0xff]  ;;  %94 = vmatpush.msra.mxu1 %v73_v7  ;;  %vm39_vm1 = vcmask 818176   ;;  %vm80_vm2 = vcmask 523264  }
   0xa   :  { %54 = vmatpush.msra.mxu0 %v30_v6  ;;  %v28_v10 = vld [vmem:[%s261_s1 + $0x30] sm:$0xff]  ;;  %v71_v11 = vld [vmem:[%s263_s3 + $0x18] sm:$0xff]  ;;  %v27_v12 = vld [vmem:[%s261_s1 + $0x28] sm:$0xff]  ;;  %s154_s14 = smov [#allocation2]   ;;  %vm104_vm3 = vcmask 39936  }
   0xb   :  { %95 = vmatpush.msra.mxu1 %v72_v9  ;;  %v26_v13 = vld [vmem:[%s261_s1 + $0x20] sm:$0xff]  ;;  %v25_v14 = vld [vmem:[%s261_s1 + $0x18] sm:$0xff]  ;;  %v24_v15 = vld [vmem:[%s261_s1 + $0x10] sm:$0xff]  ;;  %s111_s15 = sshll.u32 %s154_s14, 4  ;;  %s112_s15 = int_to_ptr.vmem [resolvable:$true] %s111_s15 }
   0xc   :  { %55 = vmatpush.msra.mxu0 %v29_v8  ;;  %v23_v16 = vld [vmem:[%s261_s1 + $0x8] sm:$0xff]  ;;  %v22_v17 = vld [vmem:[%s261_s1] sm:$0xff]  ;;  %v70_v19 = vld [vmem:[%s263_s3 + $0x10] sm:$0xff] }
   0xd   :  { %96 = vmatpush.msra.mxu1 %v71_v11  ;;  %v21_v18 = vld [vmem:[%s260_s0] sm:$0xff]  ;;  %v69_v20 = vld [vmem:[%s263_s3 + $0x8] sm:$0xff] }
   0xe   :  { %56 = vmatpush.msra.mxu0 %v28_v10  ;;  %v68_v21 = vld [vmem:[%s263_s3] sm:$0xff]  ;;  %s113_s3 = sshll.u32 %s265_s5, 4  ;;  %s114_s3 = int_to_ptr.hbm [resolvable:$true] %s113_s3 }
   0xf   :  { %97 = vmatpush.msra.mxu1 %v70_v19  ;;  %v126_v22 = vld [vmem:[%s262_s2] ss:$0 sm:$0xff] }
  0x10   :  { %57 = vmatpush.msra.mxu0 %v27_v12  ;;  %v127_v26 = vld [vmem:[%s264_s4] ss:$0 sm:$0xff] }
  0x11   :  { %98 = vmatpush.msra.mxu1 %v69_v20 }
  0x12   :  { %58 = vmatpush.msra.mxu0 %v26_v13 }
  0x13   :  { %99 = vmatpush.msra.mxu1 %v68_v21 }
  0x14   :  { %59 = vmatpush.msra.mxu0 %v25_v14 }
  0x16   :  { %60 = vmatpush.msra.mxu0 %v24_v15 }
  0x18   :  { %61 = vmatpush.msra.mxu0 %v23_v16 }
  0x1a   :  { %62 = vmatpush.msra.mxu0 %v22_v17 }
  0x1b   :  { %123 = vmatmul.msk.f32.vlgmr.msra.gmra.mxu0 %vm39_vm1, %v21_v18 }
  0x98   :  { %v64_v23 = vpop.f32.mrf.mxu0 }
  0x99   :  { %v65_v24 = vadd.f32 %v126_v22, %v64_v23 }
  0x9b   :  { %v67_v25 = vmax.f32 %v65_v24, 0.0 }
  0x9d   :  { %124 = vmatmul.msk.f32.vlgmr.msra.gmra.mxu1 %vm80_vm2, %v67_v25 }
 0x11a   :  { %v101_v27 = vpop.f32.mrf.mxu1 }
 0x11b   :  { %v102_v28 = vadd.f32 %v127_v26, %v101_v27 }
 0x11d   :  { %105 = vst.msk [vmem:[#allocation2] sm:$0xff] %vm104_vm3, %v102_v28 }
 0x11e   :  { %116 = dma.vmem_to_hbm [thread:$0]  %s112_s15, 128, %s114_s3, [#allocation3]  }
 0x11f   :  { %152 = dma.done.wait [#allocation3], 128  }
 0x120   :  { %153 = vsyncadd [#allocation3], 4294967168 }
 0x121   :  { %121 = vsyncpa [#allocation3], 1 }

</bundles_post_ra>
